<compile_context>
chip_gen: v7x
topology: tpu7x:2x2x1
jax: 0.10.0
libtpu: 0.0.40
codegen_flags: <defaults>
</compile_context>

<pallas_src>
import functools

import jax
import jax.numpy as jnp
from jax.experimental import pallas as pl
from jax.experimental.pallas import tpu as pltpu


LANE = 128     # last dim of a vreg
SUBLANE = 8    # second-to-last dim of a vreg (f32)


def _round_up(n, m):
    return ((n + m - 1) // m) * m


def _pad2d(a, rows, cols):
    pr, pc = rows - a.shape[0], cols - a.shape[1]
    if pr == 0 and pc == 0:
        return a
    return jnp.pad(a, ((0, pr), (0, pc)))


def _mlp_fused_kernel(x_ref, *refs, num_layers, acts):
    """Fused MLP: o = L_{n-1}(act(... act(L_0(x)) ...)).

    refs = (w_0, b_0, w_1, b_1, ..., w_{n-1}, b_{n-1}, o_ref).
    All operands are lane-dense (last dim multiple of 128) and live in VMEM;
    intermediate activations stay on-chip between layers.
    """
    o_ref = refs[-1]
    h = x_ref[...]
    for i in range(num_layers):
        w_ref = refs[2 * i]
        b_ref = refs[2 * i + 1]          # (1, Dout_pad) -> broadcasts over batch
        y = jnp.dot(h, w_ref[...], preferred_element_type=jnp.float32) + b_ref[...]
        a = acts[i]
        if a == "relu":
            h = jnp.maximum(y, 0.0)
        elif a == "sigmoid":
            # exp(-y) goes to the EUP slot; kept as the exact logistic formula so
            # the f32 result matches jax.nn.sigmoid to <1e-5.
            h = 1.0 / (1.0 + jnp.exp(-y))
        else:
            h = y
    o_ref[...] = h.astype(o_ref.dtype)


def mlp_forward_fused(x_pad, padded_params, acts, out_dtype):
    """x_pad: (B_pad, D0_pad). padded_params: list of (W_pad, b_pad). Returns padded output."""
    num_layers = len(padded_params)
    B_pad = x_pad.shape[0]
    Dout_pad = padded_params[-1][0].shape[1]

    flat = []
    for w, b in padded_params:
        flat.extend((w, b))

    kernel = functools.partial(_mlp_fused_kernel, num_layers=num_layers, acts=tuple(acts))
    return pl.pallas_call(
        kernel,
        out_shape=jax.ShapeDtypeStruct((B_pad, Dout_pad), out_dtype),
        in_specs=[pl.BlockSpec(memory_space=pltpu.VMEM)] * (1 + 2 * num_layers),
        out_specs=pl.BlockSpec(memory_space=pltpu.VMEM),
    )(x_pad, *flat)


class MLPPallas:
    """JAX/Pallas re-implementation of the PyTorch MLP forward pass."""

    def __init__(self, input, hidden, output, act="relu", key=None):
        if act not in ("relu", "sigmoid"):
            raise Exception("Invalid activation function")
        if input <= 0:
            raise Exception("Input cannot be 0 or below.")
        if output <= 0:
            raise Exception("Output cannot be 0 or below.")
        self.act = act
        self.input = int(input + 0.5)
        self.output = int(output + 0.5)
        hidden = [hidden] if isinstance(hidden, int) else hidden
        if len(hidden) <= 0:
            raise Exception("A MLP needs to have at least one hidden layer.")
        self.hidden = [int(h + 0.5) for h in hidden]
        for h in self.hidden:
            if h <= 0:
                raise Exception("Hidden cannot be 0 or below")

        # Deterministic parameter init (PyTorch-style uniform(-1/sqrt(fan_in), +)).
        if key is None:
            key = jax.random.PRNGKey(0)
        dims = [self.input] + self.hidden + [self.output]
        self.params = []          # unpadded (W, b) for reference / inspection
        self.padded_params = []   # lane-dense (W_pad, b_pad) fed to the kernel
        for i in range(len(dims) - 1):
            din, dout = dims[i], dims[i + 1]
            key, kw, kb = jax.random.split(key, 3)
            bound = 1.0 / (din ** 0.5)
            w = jax.random.uniform(kw, (din, dout), jnp.float32, -bound, bound)
            b = jax.random.uniform(kb, (dout,), jnp.float32, -bound, bound)
            self.params.append((w, b))
            din_p, dout_p = _round_up(din, LANE), _round_up(dout, LANE)
            w_pad = _pad2d(w, din_p, dout_p)
            b_pad = _pad2d(b.reshape(1, dout), 1, dout_p)
            self.padded_params.append((w_pad, b_pad))

        n = len(self.params)
        # hidden layers use self.act, final layer always uses sigmoid
        self.acts = [self.act] * (n - 1) + ["sigmoid"]

    def __call__(self, x):
        B, Din = x.shape
        assert Din == self.input
        B_pad = _round_up(B, SUBLANE)
        D0_pad = self.padded_params[0][0].shape[0]
        x_pad = _pad2d(x, B_pad, D0_pad)
        y_pad = mlp_forward_fused(x_pad, self.padded_params, self.acts, x.dtype)
        return y_pad[:B, : self.output]


if __name__ == "__main__":
    key = jax.random.PRNGKey(0)
    key, kx = jax.random.split(key)

    batch, in_dim, hidden_dims, out_dim = 8, 16, [32, 32], 4
    x = jax.random.normal(kx, (batch, in_dim), dtype=jnp.float32)

    ok = True
    for hidden_act in ("relu", "sigmoid"):
        key, kmodel = jax.random.split(key)
        model = MLPPallas(in_dim, hidden_dims, out_dim, act=hidden_act, key=kmodel)
        y = model(x)
        y = jax.block_until_ready(y)

        # Pure-JAX reference for a sanity check (unpadded params).
        ref = x
        n = len(model.params)
        for i, (w, b) in enumerate(model.params):
            ref = ref @ w + b
            if i < n - 1:
                ref = jnp.maximum(ref, 0.0) if hidden_act == "relu" else jax.nn.sigmoid(ref)
            else:
                ref = jax.nn.sigmoid(ref)

        ok &= (y.shape == (batch, out_dim))
        ok &= bool(jnp.allclose(y, ref, atol=1e-5, rtol=1e-5))

    assert ok
    print("KERNEL_OK")
</pallas_src>

<mosaic_0001>
module attributes {stable_mosaic.version = 11 : i64} {
  func.func @_mlp_fused_kernel(%arg0: memref<8x128xf32, #tpu.memory_space<vmem>>, %arg1: memref<128x128xf32, #tpu.memory_space<vmem>>, %arg2: memref<1x128xf32, #tpu.memory_space<vmem>>, %arg3: memref<128x128xf32, #tpu.memory_space<vmem>>, %arg4: memref<1x128xf32, #tpu.memory_space<vmem>>, %arg5: memref<128x128xf32, #tpu.memory_space<vmem>>, %arg6: memref<1x128xf32, #tpu.memory_space<vmem>>, %arg7: memref<8x128xf32, #tpu.memory_space<vmem>>) attributes {dimension_semantics = [], scalar_prefetch = 0 : i64, scratch_operands = 0 : i64, tpu.core_type = #tpu.core_type<tc>} {
    %c0 = arith.constant 0 : index
    %c0_0 = arith.constant 0 : index
    %0 = vector.load %arg0[%c0, %c0_0] : memref<8x128xf32, #tpu.memory_space<vmem>>, vector<8x128xf32>
    %c0_1 = arith.constant 0 : index
    %c0_2 = arith.constant 0 : index
    %1 = vector.load %arg1[%c0_1, %c0_2] : memref<128x128xf32, #tpu.memory_space<vmem>>, vector<128x128xf32>
    %cst = arith.constant dense<0.000000e+00> : vector<8x128xf32>
    %2 = tpu.matmul %0, %1, %cst {dimension_numbers = #tpu.dot_dimension_numbers<[1], [0], [0], [1], [0, 0, 1, 1], [], []>} : vector<8x128xf32>, vector<128x128xf32>, vector<8x128xf32> -> vector<8x128xf32>
    %c0_3 = arith.constant 0 : index
    %c0_4 = arith.constant 0 : index
    %3 = vector.load %arg2[%c0_3, %c0_4] : memref<1x128xf32, #tpu.memory_space<vmem>>, vector<1x128xf32>
    %4 = vector.broadcast %3 : vector<1x128xf32> to vector<8x128xf32>
    %5 = arith.addf %2, %4 : vector<8x128xf32>
    %cst_5 = arith.constant 0.000000e+00 : f32
    %6 = vector.broadcast %cst_5 : f32 to vector<8x128xf32>
    %7 = arith.maximumf %5, %6 : vector<8x128xf32>
    %c0_6 = arith.constant 0 : index
    %c0_7 = arith.constant 0 : index
    %8 = vector.load %arg3[%c0_6, %c0_7] : memref<128x128xf32, #tpu.memory_space<vmem>>, vector<128x128xf32>
    %cst_8 = arith.constant dense<0.000000e+00> : vector<8x128xf32>
    %9 = tpu.matmul %7, %8, %cst_8 {dimension_numbers = #tpu.dot_dimension_numbers<[1], [0], [0], [1], [0, 0, 1, 1], [], []>} : vector<8x128xf32>, vector<128x128xf32>, vector<8x128xf32> -> vector<8x128xf32>
    %c0_9 = arith.constant 0 : index
    %c0_10 = arith.constant 0 : index
    %10 = vector.load %arg4[%c0_9, %c0_10] : memref<1x128xf32, #tpu.memory_space<vmem>>, vector<1x128xf32>
    %11 = vector.broadcast %10 : vector<1x128xf32> to vector<8x128xf32>
    %12 = arith.addf %9, %11 : vector<8x128xf32>
    %cst_11 = arith.constant 0.000000e+00 : f32
    %13 = vector.broadcast %cst_11 : f32 to vector<8x128xf32>
    %14 = arith.maximumf %12, %13 : vector<8x128xf32>
    %c0_12 = arith.constant 0 : index
    %c0_13 = arith.constant 0 : index
    %15 = vector.load %arg5[%c0_12, %c0_13] : memref<128x128xf32, #tpu.memory_space<vmem>>, vector<128x128xf32>
    %cst_14 = arith.constant dense<0.000000e+00> : vector<8x128xf32>
    %16 = tpu.matmul %14, %15, %cst_14 {dimension_numbers = #tpu.dot_dimension_numbers<[1], [0], [0], [1], [0, 0, 1, 1], [], []>} : vector<8x128xf32>, vector<128x128xf32>, vector<8x128xf32> -> vector<8x128xf32>
    %c0_15 = arith.constant 0 : index
    %c0_16 = arith.constant 0 : index
    %17 = vector.load %arg6[%c0_15, %c0_16] : memref<1x128xf32, #tpu.memory_space<vmem>>, vector<1x128xf32>
    %18 = vector.broadcast %17 : vector<1x128xf32> to vector<8x128xf32>
    %19 = arith.addf %16, %18 : vector<8x128xf32>
    %cst_17 = arith.constant 0.000000e+00 : f32
    %20 = vector.broadcast %cst_17 : f32 to vector<8x128xf32>
    %21 = arith.subf %20, %19 : vector<8x128xf32>
    %22 = math.exp %21 : vector<8x128xf32>
    %cst_18 = arith.constant 1.000000e+00 : f32
    %23 = vector.broadcast %cst_18 : f32 to vector<8x128xf32>
    %24 = arith.addf %23, %22 : vector<8x128xf32>
    %cst_19 = arith.constant 1.000000e+00 : f32
    %25 = vector.broadcast %cst_19 : f32 to vector<8x128xf32>
    %26 = arith.divf %25, %24 : vector<8x128xf32>
    %c0_20 = arith.constant 0 : index
    %c0_21 = arith.constant 0 : index
    %27 = vector.load %arg7[%c0_20, %c0_21] : memref<8x128xf32, #tpu.memory_space<vmem>>, vector<8x128xf32>
    tpu.vector_store %arg7[%c0_20, %c0_21], %26 {strides = array<i32>} : memref<8x128xf32, #tpu.memory_space<vmem>>, vector<8x128xf32>,
    return
  }
}

</mosaic_0001>

<bundles_post_ra>
// kernel: tpu_custom_call.1
= control target key start
LH: loop header
LB: loop body
LE: loop exit
PB: predicated region body
PF: predicated region fallthrough
CT: control target
= control target key end

     0   :  { %12 = vsyncpa [#allocation3], 0  ;;  %s907_s0 = inlined_call_operand.hbm [shape: f32[8,128], index: 0, kind: input, shape index: {}]   ;;  %s908_s1 = inlined_call_operand.hbm [shape: f32[128,128], index: 1, kind: input, shape index: {}]   ;;  %s909_s2 = inlined_call_operand.vmem [shape: f32[1,128], index: 2, kind: input, shape index: {}]   ;;  %s910_s3 = inlined_call_operand.hbm [shape: f32[128,128], index: 3, kind: input, shape index: {}]   ;;  %s911_s4 = inlined_call_operand.vmem [shape: f32[1,128], index: 4, kind: input, shape index: {}]   ;;  %s912_s5 = inlined_call_operand.hbm [shape: f32[128,128], index: 5, kind: input, shape index: {}]   ;;  %s913_s6 = inlined_call_operand.vmem [shape: f32[1,128], index: 6, kind: input, shape index: {}]   ;;  %s914_s7 = inlined_call_operand.hbm [shape: f32[8,128], index: 7, kind: output, shape index: {}]  }
   0x1   :  { %13 = vsyncpa [#allocation6], 0 }
   0x2   :  { %14 = vsyncpa [#allocation9], 0 }
   0x3   :  { %15 = vsyncpa [#allocation4], 0  ;;  %s749_s24 = smov [#allocation5]   ;;  %s631_s28 = scalar_lea.hbm %s908_s1, 2048 }
   0x4   :  { %s31_s25 = sshll.u32 %s749_s24, 4  ;;  %p632_p0 = scmp.ne.s32.totalorder %s908_s1, %s631_s28  ;;  %s32_s25 = int_to_ptr.vmem [resolvable:$true] %s31_s25 }
   0x5   :  { %p635_p1 = scmp.lt.u32.totalorder %s631_s28, %s908_s1 }
   0x7   :  { %p637_p2 = pnand %p635_p1, %p632_p0 }
   0x9   :  { %640 = shalt.err (!%p637_p2)
}
   0xa   :  { %s641_s10 = scalar_lea.vmem %s32_s25, 2048  ;;  %p646_p4 = scmp.lt.s32.totalorder %s32_s25, %s32_s25 }
   0xb   :  { %p642_p3 = scmp.ne.s32.totalorder %s32_s25, %s641_s10  ;;  %p647_p5 = scmp.lt.s32.totalorder %s641_s10, %s641_s10 }
   0xd   :  { %p648_p6 = por %p647_p5, %p646_p4 }
   0xf   :  { %p649_p7 = pnand %p648_p6, %p642_p3 }
  0x11   :  { %652 = shalt.err (!%p649_p7)
}
  0x12   :  { %s750_s11 = smov 128   ;;  %s751_s12 = smov 8  }
  0x13   :  { %37 = dma.hbm_to_vmem [thread:$0]  %s908_s1, 2048, %s32_s25, [#allocation6], %s750_s11, %s750_s11, %s751_s12  }
  0x14   :  { %s752_s15 = smov [#allocation2]   ;;  %s753_s17 = smov [#allocation7]  }
  0x15   :  { %s22_s16 = sshll.u32 %s752_s15, 4  ;;  %s45_s18 = sshll.u32 %s753_s17, 4  ;;  %s23_s16 = int_to_ptr.vmem [resolvable:$true] %s22_s16  ;;  %s46_s18 = int_to_ptr.vmem [resolvable:$true] %s45_s18 }
  0x16   :  { %s653_s21 = scalar_lea.hbm %s907_s0, 128 }
  0x17   :  { %p654_p8 = scmp.ne.s32.totalorder %s907_s0, %s653_s21  ;;  %p657_p9 = scmp.lt.u32.totalorder %s653_s21, %s907_s0 }
  0x19   :  { %p659_p10 = pnand %p657_p9, %p654_p8 }
  0x1b   :  { %662 = shalt.err (!%p659_p10)
}
  0x1c   :  { %s663_s1 = scalar_lea.vmem %s23_s16, 128  ;;  %p668_p12 = scmp.lt.s32.totalorder %s23_s16, %s23_s16 }
  0x1d   :  { %p664_p11 = scmp.ne.s32.totalorder %s23_s16, %s663_s1  ;;  %p669_p13 = scmp.lt.s32.totalorder %s663_s1, %s663_s1 }
  0x1f   :  { %p670_p0 = por %p669_p13, %p668_p12 }
  0x21   :  { %p671_p1 = pnand %p670_p0, %p664_p11 }
  0x23   :  { %674 = shalt.err (!%p671_p1)
}
  0x24   :  { %25 = dma.hbm_to_vmem [thread:$0]  %s907_s0, 128, %s23_s16, [#allocation3]  }
  0x25   :  { %s675_s30 = scalar_lea.hbm %s910_s3, 2048 }
  0x26   :  { %p676_p2 = scmp.ne.s32.totalorder %s910_s3, %s675_s30  ;;  %p679_p3 = scmp.lt.u32.totalorder %s675_s30, %s910_s3 }
  0x28   :  { %p681_p4 = pnand %p679_p3, %p676_p2 }
  0x2a   :  { %684 = shalt.err (!%p681_p4)
}
  0x2b   :  { %s685_s14 = scalar_lea.vmem %s46_s18, 2048  ;;  %p690_p6 = scmp.lt.s32.totalorder %s46_s18, %s46_s18 }
  0x2c   :  { %p686_p5 = scmp.ne.s32.totalorder %s46_s18, %s685_s14  ;;  %p691_p7 = scmp.lt.s32.totalorder %s685_s14, %s685_s14 }
  0x2e   :  { %p692_p8 = por %p691_p7, %p690_p6 }
  0x30   :  { %p693_p9 = pnand %p692_p8, %p686_p5 }
  0x32   :  { %696 = shalt.err (!%p693_p9)
}
  0x33   :  { %51 = dma.hbm_to_vmem [thread:$0]  %s910_s3, 2048, %s46_s18, [#allocation6], %s750_s11, %s750_s11, %s751_s12  }
  0x34   :  { %s754_s16 = smov [#allocation8]   ;;  %s697_s21 = scalar_lea.hbm %s912_s5, 2048 }
  0x35   :  { %s59_s17 = sshll.u32 %s754_s16, 4  ;;  %p698_p10 = scmp.ne.s32.totalorder %s912_s5, %s697_s21  ;;  %s60_s17 = int_to_ptr.vmem [resolvable:$true] %s59_s17 }
  0x36   :  { %p701_p11 = scmp.lt.u32.totalorder %s697_s21, %s912_s5 }
  0x38   :  { %p703_p12 = pnand %p701_p11, %p698_p10 }
  0x3a   :  { %706 = shalt.err (!%p703_p12)
}
  0x3b   :  { %s707_s1 = scalar_lea.vmem %s60_s17, 2048  ;;  %p712_p0 = scmp.lt.s32.totalorder %s60_s17, %s60_s17 }
  0x3c   :  { %p708_p13 = scmp.ne.s32.totalorder %s60_s17, %s707_s1  ;;  %p713_p1 = scmp.lt.s32.totalorder %s707_s1, %s707_s1 }
  0x3e   :  { %p714_p2 = por %p713_p1, %p712_p0 }
  0x40   :  { %p715_p3 = pnand %p714_p2, %p708_p13 }
  0x42   :  { %718 = shalt.err (!%p715_p3)
}
  0x43   :  { %65 = dma.hbm_to_vmem [thread:$0]  %s912_s5, 2048, %s60_s17, [#allocation9], %s750_s11, %s750_s11, %s751_s12  }
  0x44   :  { %741 = dma.done.wait [#allocation3], 128  }
  0x45   :  { %742 = vsyncadd [#allocation3], 4294967168 }
  0x46   :  { %743 = dma.done.wait [#allocation6], 4096  }
  0x47   :  { %744 = vsyncadd [#allocation6], 4294963200 }
  0x48   :  { %745 = dma.done.wait [#allocation9], 2048  }
  0x49   :  { %746 = vsyncadd [#allocation9], 4294965248  ;;  %v755_v0 = vmov 0.0|0.0   ;;  %vm756_vm0 = vmmov 0   ;;  %v757_v1 = vmov 0.0   ;;  %v81_v2 = vld [vmem:[#allocation5] sm:$0xff] }
  0x4a   :  { %545 = vmatprep.subr.bf16.mxu0 %v755_v0  ;;  %472 = vmatprep.mubr.msk.f32.mxu0 %vm756_vm0, %v757_v1  ;;  %v82_v3 = vld [vmem:[#allocation5 + $0x8] sm:$0xff]  ;;  %v83_v4 = vld [vmem:[#allocation5 + $0x10] sm:$0xff]  ;;  %v84_v6 = vld [vmem:[#allocation5 + $0x18] sm:$0xff]  ;;  %s758_s28 = smov [#allocation10]  }
  0x4b   :  { %569 = vmatprep.subr.bf16.mxu1 %v755_v0  ;;  %507 = vmatprep.mubr.msk.f32.mxu1 %vm756_vm0, %v757_v1  ;;  %v546_v5 = vpack.c.bf16 %v82_v3, %v81_v2  ;;  %v549_v7 = vpack.c.bf16 %v84_v6, %v83_v4  ;;  %v85_v8 = vld [vmem:[#allocation5 + $0x20] sm:$0xff]  ;;  %v86_v9 = vld [vmem:[#allocation5 + $0x28] sm:$0xff]  ;;  %v177_v12 = vld [vmem:[#allocation7 + $0x10] sm:$0xff] }
  0x4c   :  { %v175_v10 = vld [vmem:[#allocation7] sm:$0xff]  ;;  %v176_v11 = vld [vmem:[#allocation7 + $0x8] sm:$0xff]  ;;  %v178_v13 = vld [vmem:[#allocation7 + $0x18] sm:$0xff]  ;;  %v552_v14 = vpack.c.bf16 %v86_v9, %v85_v8 }
  0x4d   :  { %547 = vmatpush3.bf16.msra.mxu0 %v546_v5  ;;  %v570_v15 = vpack.c.bf16 %v176_v11, %v175_v10  ;;  %v87_v16 = vld [vmem:[#allocation5 + $0x30] sm:$0xff]  ;;  %v88_v17 = vld [vmem:[#allocation5 + $0x38] sm:$0xff]  ;;  %v573_v18 = vpack.c.bf16 %v178_v13, %v177_v12  ;;  %v179_v19 = vld [vmem:[#allocation7 + $0x20] sm:$0xff] }
  0x4e   :  { %548 = vmatprep.subr.bf16.mxu0 %v755_v0  ;;  %v180_v20 = vld [vmem:[#allocation7 + $0x28] sm:$0xff]  ;;  %v555_v21 = vpack.c.bf16 %v88_v17, %v87_v16  ;;  %v89_v22 = vld [vmem:[#allocation5 + $0x40] sm:$0xff]  ;;  %v181_v25 = vld [vmem:[#allocation7 + $0x30] sm:$0xff] }
  0x4f   :  { %571 = vmatpush3.bf16.msra.mxu1 %v570_v15  ;;  %v90_v23 = vld [vmem:[#allocation5 + $0x48] sm:$0xff]  ;;  %v576_v24 = vpack.c.bf16 %v180_v20, %v179_v19  ;;  %v182_v26 = vld [vmem:[#allocation7 + $0x38] sm:$0xff]  ;;  %v91_v28 = vld [vmem:[#allocation5 + $0x50] sm:$0xff] }
  0x50   :  { %572 = vmatprep.subr.bf16.mxu1 %v755_v0  ;;  %v558_v27 = vpack.c.bf16 %v90_v23, %v89_v22  ;;  %v92_v29 = vld [vmem:[#allocation5 + $0x58] sm:$0xff]  ;;  %v579_v30 = vpack.c.bf16 %v182_v26, %v181_v25  ;;  %v183_v31 = vld [vmem:[#allocation7 + $0x40] sm:$0xff]  ;;  %v184_v32 = vld [vmem:[#allocation7 + $0x48] sm:$0xff] }
  0x51   :  { %550 = vmatpush3.bf16.msra.mxu0 %v549_v7  ;;  %v561_v33 = vpack.c.bf16 %v92_v29, %v91_v28  ;;  %v93_v34 = vld [vmem:[#allocation5 + $0x60] sm:$0xff]  ;;  %v94_v35 = vld [vmem:[#allocation5 + $0x68] sm:$0xff]  ;;  %v582_v36 = vpack.c.bf16 %v184_v32, %v183_v31  ;;  %v185_v37 = vld [vmem:[#allocation7 + $0x50] sm:$0xff] }
  0x52   :  { %551 = vmatprep.subr.bf16.mxu0 %v755_v0  ;;  %v186_v38 = vld [vmem:[#allocation7 + $0x58] sm:$0xff]  ;;  %v564_v39 = vpack.c.bf16 %v94_v35, %v93_v34  ;;  %v95_v40 = vld [vmem:[#allocation5 + $0x70] sm:$0xff]  ;;  %v187_v43 = vld [vmem:[#allocation7 + $0x60] sm:$0xff] }
  0x53   :  { %574 = vmatpush3.bf16.msra.mxu1 %v573_v18  ;;  %v96_v41 = vld [vmem:[#allocation5 + $0x78] sm:$0xff]  ;;  %v585_v42 = vpack.c.bf16 %v186_v38, %v185_v37  ;;  %v188_v44 = vld [vmem:[#allocation7 + $0x68] sm:$0xff]  ;;  %v189_v48 = vld [vmem:[#allocation7 + $0x70] sm:$0xff] }
  0x54   :  { %575 = vmatprep.subr.bf16.mxu1 %v755_v0  ;;  %v567_v45 = vpack.c.bf16 %v96_v41, %v95_v40  ;;  %v588_v46 = vpack.c.bf16 %v188_v44, %v187_v43  ;;  %v80_v47 = vld [vmem:[#allocation2] sm:$0xff]  ;;  %v269_v51 = vld [vmem:[#allocation8] sm:$0xff]  ;;  %v270_v52 = vld [vmem:[#allocation8 + $0x8] sm:$0xff] }
  0x55   :  { %553 = vmatpush3.bf16.msra.mxu0 %v552_v14  ;;  %v190_v49 = vld [vmem:[#allocation7 + $0x78] sm:$0xff]  ;;  %v271_v53 = vld [vmem:[#allocation8 + $0x10] sm:$0xff]  ;;  %v594_v54 = vpack.c.bf16 %v270_v52, %v269_v51  ;;  %v273_v57 = vld [vmem:[#allocation8 + $0x20] sm:$0xff] }
  0x56   :  { %554 = vmatprep.subr.bf16.mxu0 %v755_v0  ;;  %v591_v50 = vpack.c.bf16 %v190_v49, %v189_v48  ;;  %v272_v55 = vld [vmem:[#allocation8 + $0x18] sm:$0xff]  ;;  %v274_v58 = vld [vmem:[#allocation8 + $0x28] sm:$0xff]  ;;  %v275_v60 = vld [vmem:[#allocation8 + $0x30] sm:$0xff] }
  0x57   :  { %577 = vmatpush3.bf16.msra.mxu1 %v576_v24  ;;  %v597_v56 = vpack.c.bf16 %v272_v55, %v271_v53  ;;  %v600_v59 = vpack.c.bf16 %v274_v58, %v273_v57  ;;  %v276_v61 = vld [vmem:[#allocation8 + $0x38] sm:$0xff]  ;;  %v277_v63 = vld [vmem:[#allocation8 + $0x40] sm:$0xff]  ;;  %v279_v3 = vld [vmem:[#allocation8 + $0x50] sm:$0xff] }
  0x58   :  { %578 = vmatprep.subr.bf16.mxu1 %v755_v0  ;;  %v603_v62 = vpack.c.bf16 %v276_v61, %v275_v60  ;;  %v280_v4 = vld [vmem:[#allocation8 + $0x58] sm:$0xff]  ;;  %v281_v6 = vld [vmem:[#allocation8 + $0x60] sm:$0xff]  ;;  %v282_v7 = vld [vmem:[#allocation8 + $0x68] sm:$0xff] }
  0x59   :  { %556 = vmatpush3.bf16.msra.mxu0 %v555_v21  ;;  %v609_v5 = vpack.c.bf16 %v280_v4, %v279_v3  ;;  %v612_v8 = vpack.c.bf16 %v282_v7, %v281_v6  ;;  %v386_v9 = vld [vmem:[%s909_s2] ss:$0 sm:$0xff]  ;;  %v283_v14 = vld [vmem:[#allocation8 + $0x70] sm:$0xff] }
  0x5a   :  { %557 = vmatprep.subr.bf16.mxu0 %v755_v0  ;;  %v284_v15 = vld [vmem:[#allocation8 + $0x78] sm:$0xff] }
  0x5b   :  { %580 = vmatpush3.bf16.msra.mxu1 %v579_v30  ;;  %v615_v16 = vpack.c.bf16 %v284_v15, %v283_v14  ;;  %v387_v17 = vld [vmem:[%s911_s4] ss:$0 sm:$0xff]  ;;  %s375_s4 = sshll.u32 %s758_s28, 4  ;;  %s376_s4 = int_to_ptr.vmem [resolvable:$true] %s375_s4 }
  0x5c   :  { %581 = vmatprep.subr.bf16.mxu1 %v755_v0  ;;  %v388_v21 = vld [vmem:[%s913_s6] ss:$0 sm:$0xff]  ;;  %s719_s29 = scalar_lea.vmem %s376_s4, 128  ;;  %p724_p5 = scmp.lt.s32.totalorder %s376_s4, %s376_s4 }
  0x5d   :  { %559 = vmatpush3.bf16.msra.mxu0 %v558_v27  ;;  %p720_p4 = scmp.ne.s32.totalorder %s376_s4, %s719_s29  ;;  %p725_p6 = scmp.lt.s32.totalorder %s719_s29, %s719_s29 }
  0x5e   :  { %560 = vmatprep.subr.bf16.mxu0 %v755_v0 }
  0x5f   :  { %583 = vmatpush3.bf16.msra.mxu1 %v582_v36  ;;  %p726_p7 = por %p725_p6, %p724_p5 }
  0x60   :  { %584 = vmatprep.subr.bf16.mxu1 %v755_v0 }
  0x61   :  { %562 = vmatpush3.bf16.msra.mxu0 %v561_v33  ;;  %p727_p8 = pnand %p726_p7, %p720_p4 }
  0x62   :  { %563 = vmatprep.subr.bf16.mxu0 %v755_v0 }
  0x63   :  { %586 = vmatpush3.bf16.msra.mxu1 %v585_v42 }
  0x64   :  { %587 = vmatprep.subr.bf16.mxu1 %v755_v0 }
  0x65   :  { %565 = vmatpush3.bf16.msra.mxu0 %v564_v39 }
  0x66   :  { %566 = vmatprep.subr.bf16.mxu0 %v755_v0 }
  0x67   :  { %589 = vmatpush3.bf16.msra.mxu1 %v588_v46 }
  0x68   :  { %590 = vmatprep.subr.bf16.mxu1 %v755_v0 }
  0x69   :  { %568 = vmatpush3.bf16.msra.mxu0 %v567_v45 }
  0x6a   :  { %593 = vmatprep.subr.bf16.mxu0 %v755_v0 }
  0x6b   :  { %592 = vmatpush3.bf16.msra.mxu1 %v591_v50 }
  0x6c   :  { %473 = vmatmul.mubr.f32.vlgmr.msra.gmra.mrb[0].mxu0 %v80_v47 }
  0x6d   :  { %542 = vmatprep.mubr.msk.f32.mxu0 %vm756_vm0, %v757_v1  ;;  %595 = vmatpush3.bf16.msra.mxu0 %v594_v54  ;;  %v278_v1 = vld [vmem:[#allocation8 + $0x48] sm:$0xff] }
  0x6e   :  { %596 = vmatprep.subr.bf16.mxu0 %v755_v0  ;;  %v606_v2 = vpack.c.bf16 %v278_v1, %v277_v63 }
  0x71   :  { %598 = vmatpush3.bf16.msra.mxu0 %v597_v56 }
  0x72   :  { %599 = vmatprep.subr.bf16.mxu0 %v755_v0 }
  0x75   :  { %601 = vmatpush3.bf16.msra.mxu0 %v600_v59 }
  0x76   :  { %602 = vmatprep.subr.bf16.mxu0 %v755_v0 }
  0x79   :  { %604 = vmatpush3.bf16.msra.mxu0 %v603_v62 }
  0x7a   :  { %605 = vmatprep.subr.bf16.mxu0 %v755_v0 }
  0x7d   :  { %607 = vmatpush3.bf16.msra.mxu0 %v606_v2 }
  0x7e   :  { %608 = vmatprep.subr.bf16.mxu0 %v755_v0 }
  0x81   :  { %610 = vmatpush3.bf16.msra.mxu0 %v609_v5 }
  0x82   :  { %611 = vmatprep.subr.bf16.mxu0 %v755_v0 }
  0x85   :  { %613 = vmatpush3.bf16.msra.mxu0 %v612_v8 }
  0x86   :  { %614 = vmatprep.subr.bf16.mxu0 %v755_v0 }
  0x89   :  { %616 = vmatpush3.bf16.msra.mxu0 %v615_v16 }
 0x13f   :  { %v170_v10 = vpop.f32.mrb[0].mxu0 }
 0x140   :  { %v171_v11 = vadd.f32 %v386_v9, %v170_v10  ;;  %v474_v12 = vpop.f32.mrb[1].mxu0 }
 0x142   :  { %v174_v13 = vmax.f32 %v171_v11, 0.0 }
 0x144   :  { %508 = vmatmul.mubr.f32.vlgmr.msra.gmra.mrb[0].mxu1 %v174_v13 }
 0x217   :  { %v264_v18 = vpop.f32.mrb[0].mxu1 }
 0x218   :  { %v265_v19 = vadd.f32 %v387_v17, %v264_v18  ;;  %v509_v0 = vpop.f32.mrb[1].mxu1 }
 0x21a   :  { %v268_v20 = vmax.f32 %v265_v19, 0.0 }
 0x21c   :  { %543 = vmatmul.mubr.f32.vlgmr.msra.gmra.mrb[2].mxu0 %v268_v20 }
 0x2ef   :  { %v358_v22 = vpop.f32.mrb[2].mxu0 }
 0x2f0   :  { %v359_v23 = vadd.f32 %v388_v21, %v358_v22  ;;  %v544_v24 = vpop.f32.mrb[3].mxu0 }
 0x2f2   :  { %v362_v25 = vsub.f32 0.0, %v359_v23 }
 0x2f4   :  { %v363_v26 = vmul.f32 1.442695, %v362_v25 }
 0x2f6   :  { %627 = vpow2.f32 %v363_v26 }
 0x300   :  { %v628_v27 = vpop.eup %627 }
 0x301   :  { %v365_v28 = vadd.f32 1.0, %v628_v27 }
 0x303   :  { %629 = vrcp.f32 %v365_v28 }
 0x30d   :  { %v630_v29 = vpop.eup %629 }
 0x30e   :  { %368 = vst [vmem:[#allocation10] sm:$0xff] %v630_v29 }
 0x30f   :  { %730 = shalt.err (!%p727_p8)
}
 0x310   :  { %s731_s8 = scalar_lea.hbm %s914_s7, 128 }
 0x311   :  { %p732_p9 = scmp.ne.s32.totalorder %s914_s7, %s731_s8  ;;  %p735_p10 = scmp.lt.u32.totalorder %s731_s8, %s914_s7 }
 0x313   :  { %p737_p11 = pnand %p735_p10, %p732_p9 }
 0x315   :  { %740 = shalt.err (!%p737_p11)
}
 0x316   :  { %378 = dma.vmem_to_hbm [thread:$0]  %s376_s4, 128, %s914_s7, [#allocation4]  }
 0x317   :  { %747 = dma.done.wait [#allocation4], 128  }
 0x318   :  { %748 = vsyncadd [#allocation4], 4294967168 }
 0x319   :  { %382 = vsyncpa [#allocation3], 1 }
 0x31a   :  { %383 = vsyncpa [#allocation6], 1 }
 0x31b   :  { %384 = vsyncpa [#allocation9], 1 }
 0x31c   :  { %385 = vsyncpa [#allocation4], 1 }

</bundles_post_ra>
